<compile_context>
chip_gen: v7x
topology: tpu7x:2x2x1
jax: 0.10.0
libtpu: 0.0.40
codegen_flags: <defaults>
</compile_context>

<pallas_src>
import functools

import jax
import jax.numpy as jnp
from jax.experimental import pallas as pl
from jax.experimental.pallas import tpu as pltpu


def _lstm_kernel(x_ref, m_ref, wih_ref, whh_ref, bias_ref, o_ref, gx_ref,
                 *, T, B, H, unroll):
    """Fused input projection + masked LSTM recurrence, one kernel invocation.

    x_ref   : (T*B, Din) f32  time-major, batch padded to a multiple of 8
    m_ref   : (T*B, 1)   f32  0/1 length mask, same layout
    wih_ref : (Din, 4H)  f32  W_ih^T
    whh_ref : (H, 4H)    f32  W_hh^T
    bias_ref: (1, 4H)    f32  b_ih + b_hh
    o_ref   : (T*B, H)   f32  output (zeros at padded positions)
    gx_ref  : (T*B, 4H)  f32  VMEM scratch for the hoisted input projection
    """
    # Hoisted input projection: ONE large MXU matmul for all T steps; the gate
    # tensor lives only in VMEM.
    gx_ref[...] = (
        jnp.dot(x_ref[...], wih_ref[...], preferred_element_type=jnp.float32)
        + bias_ref[...]
    )

    whh = whh_ref[...]  # (H, 4H), loaded once and reused every step

    def step(t, carry):
        h, c = carry
        base = pl.multiple_of(t * B, B)  # B is a multiple of 8 -> aligned window

        # Single MXU matmul per serial step; input projection already folded in.
        gates = gx_ref[pl.ds(base, B), :] + jnp.dot(
            h, whh, preferred_element_type=jnp.float32)            # (B, 4H)

        # Transcendentals over the full 4H-lane slab (2 EUP launches), then slice.
        sig = jax.nn.sigmoid(gates)
        tan = jnp.tanh(gates)
        i_g = sig[:, 0 * H:1 * H]
        f_g = sig[:, 1 * H:2 * H]
        g_g = tan[:, 2 * H:3 * H]
        o_g = sig[:, 3 * H:4 * H]

        c_new = f_g * c + i_g * g_g
        h_new = o_g * jnp.tanh(c_new)

        # Packed-sequence behaviour: freeze state past each sequence's length,
        # zero the output at padded positions.  One boolean mask, 3 selects.
        m_t = m_ref[pl.ds(base, B), :] > 0.5                        # (B, 1) bool
        c = jnp.where(m_t, c_new, c)
        h = jnp.where(m_t, h_new, h)
        o_ref[pl.ds(base, B), :] = jnp.where(m_t, h_new, 0.0).astype(o_ref.dtype)
        return h, c

    h0 = jnp.zeros((B, H), jnp.float32)
    c0 = jnp.zeros((B, H), jnp.float32)
    jax.lax.fori_loop(0, T, step, (h0, c0), unroll=unroll)


@jax.jit
def lstm_seq2seq_encoder(x, mask, w_ih, w_hh, b_ih, b_hh):
    """Pallas implementation of LstmSeq2SeqEncoder.forward (single layer, unidir).

    x    : (B, T, Din)
    mask : (B, T)  0/1 prefix length mask
    w_ih : (4H, Din), w_hh: (4H, H), b_ih/b_hh: (4H,)  -- PyTorch nn.LSTM layout.
    Returns (B, T, H) float32 with zeros at padded positions.
    """
    B, T, Din = x.shape
    H = w_hh.shape[1]
    Bp = ((B + 7) // 8) * 8  # pad batch to a whole number of sublane tiles

    xf = x.astype(jnp.float32)

    # Time-major, batch-padded, flattened layouts (cheap XLA layout plumbing;
    # all heavy lifting happens inside the kernel).
    x_tm = jnp.swapaxes(xf, 0, 1)                                    # (T, B, Din)
    x_tm = jnp.pad(x_tm, ((0, 0), (0, Bp - B), (0, 0)))
    x_flat = x_tm.reshape(T * Bp, Din)                               # (T*Bp, Din)

    m_tm = jnp.swapaxes(mask.astype(jnp.float32), 0, 1)              # (T, B)
    m_tm = jnp.pad(m_tm, ((0, 0), (0, Bp - B)))
    m_flat = m_tm.reshape(T * Bp, 1)                                 # (T*Bp, 1)

    wih_t = jnp.transpose(w_ih.astype(jnp.float32), (1, 0))          # (Din, 4H)
    whh_t = jnp.transpose(w_hh.astype(jnp.float32), (1, 0))          # (H, 4H)
    bias = (b_ih + b_hh).astype(jnp.float32).reshape(1, 4 * H)       # (1, 4H)

    kernel = functools.partial(
        _lstm_kernel, T=T, B=Bp, H=H, unroll=bool(T <= 32))

    out_flat = pl.pallas_call(
        kernel,
        out_shape=jax.ShapeDtypeStruct((T * Bp, H), jnp.float32),
        in_specs=[
            pl.BlockSpec(memory_space=pltpu.MemorySpace.VMEM),  # x (time-major)
            pl.BlockSpec(memory_space=pltpu.MemorySpace.VMEM),  # mask
            pl.BlockSpec(memory_space=pltpu.MemorySpace.VMEM),  # W_ih^T
            pl.BlockSpec(memory_space=pltpu.MemorySpace.VMEM),  # W_hh^T
            pl.BlockSpec(memory_space=pltpu.MemorySpace.VMEM),  # bias
        ],
        out_specs=pl.BlockSpec(memory_space=pltpu.MemorySpace.VMEM),
        scratch_shapes=[pltpu.VMEM((T * Bp, 4 * H), jnp.float32)],   # gate scratch
    )(x_flat, m_flat, wih_t, whh_t, bias)

    # Drop batch padding and return batch-first layout.
    out = out_flat.reshape(T, Bp, H)[:, :B, :]
    return jnp.swapaxes(out, 0, 1)  # (B, T, H)


def _lstm_reference(x, mask, w_ih, w_hh, b_ih, b_hh):
    """Pure-JAX reference of the same masked LSTM (for correctness check)."""
    B, T, Din = x.shape
    H = w_hh.shape[1]
    wih_t = w_ih.T
    whh_t = w_hh.T
    b = b_ih + b_hh

    def step(carry, inp):
        h, c = carry
        x_t, m_t = inp
        gates = x_t @ wih_t + h @ whh_t + b
        i = jax.nn.sigmoid(gates[:, 0 * H:1 * H])
        f = jax.nn.sigmoid(gates[:, 1 * H:2 * H])
        g = jnp.tanh(gates[:, 2 * H:3 * H])
        o = jax.nn.sigmoid(gates[:, 3 * H:4 * H])
        c_new = f * c + i * g
        h_new = o * jnp.tanh(c_new)
        m = m_t[:, None]
        c = m * c_new + (1.0 - m) * c
        h = m * h_new + (1.0 - m) * h
        return (h, c), m * h_new

    init = (jnp.zeros((B, H), jnp.float32), jnp.zeros((B, H), jnp.float32))
    xs = (jnp.swapaxes(x, 0, 1), jnp.swapaxes(mask.astype(jnp.float32), 0, 1))
    _, ys = jax.lax.scan(step, init, xs)
    return jnp.swapaxes(ys, 0, 1)


if __name__ == "__main__":
    # Small shapes consistent with the module: batch=2, seq=8, input_size=16, hidden=32.
    B, T, Din, H = 2, 8, 16, 32

    key = jax.random.PRNGKey(0)
    k_x, k_wih, k_whh, k_bih, k_bhh = jax.random.split(key, 5)

    x = jax.random.normal(k_x, (B, T, Din), dtype=jnp.float32)

    # Mask: first sequence full length (so pad_packed output length == T), second length 5.
    lengths = jnp.array([T, 5], dtype=jnp.int32)
    mask = (jnp.arange(T)[None, :] < lengths[:, None]).astype(jnp.int32)  # (B, T)

    # Deterministic LSTM parameters (PyTorch nn.LSTM shapes), uniform(-1/sqrt(H), 1/sqrt(H)).
    s = 1.0 / jnp.sqrt(jnp.float32(H))
    w_ih = jax.random.uniform(k_wih, (4 * H, Din), jnp.float32, -s, s)
    w_hh = jax.random.uniform(k_whh, (4 * H, H), jnp.float32, -s, s)
    b_ih = jax.random.uniform(k_bih, (4 * H,), jnp.float32, -s, s)
    b_hh = jax.random.uniform(k_bhh, (4 * H,), jnp.float32, -s, s)

    out = lstm_seq2seq_encoder(x, mask, w_ih, w_hh, b_ih, b_hh)
    out = jax.block_until_ready(out)

    ref = _lstm_reference(x, mask, w_ih, w_hh, b_ih, b_hh)
    assert out.shape == (B, T, H), out.shape
    assert jnp.allclose(out, ref, atol=1e-5, rtol=1e-5), "mismatch vs reference"
    # Padded positions must be exactly zero (pad_packed_sequence semantics).
    assert jnp.all(out[1, 5:, :] == 0.0)

    print("KERNEL_OK")
</pallas_src>

<mosaic_0001>
module attributes {stable_mosaic.version = 11 : i64} {
  func.func @_lstm_kernel(%arg0: memref<64x16xf32, #tpu.memory_space<vmem>>, %arg1: memref<64x1xf32, #tpu.memory_space<vmem>>, %arg2: memref<16x128xf32, #tpu.memory_space<vmem>>, %arg3: memref<32x128xf32, #tpu.memory_space<vmem>>, %arg4: memref<1x128xf32, #tpu.memory_space<vmem>>, %arg5: memref<64x32xf32, #tpu.memory_space<vmem>>, %arg6: memref<64x128xf32, #tpu.memory_space<vmem>>) attributes {dimension_semantics = [], scalar_prefetch = 0 : i64, scratch_operands = 1 : i64, tpu.core_type = #tpu.core_type<tc>} {
    %c0 = arith.constant 0 : index
    %c0_0 = arith.constant 0 : index
    %0 = vector.load %arg0[%c0, %c0_0] : memref<64x16xf32, #tpu.memory_space<vmem>>, vector<64x16xf32>
    %c0_1 = arith.constant 0 : index
    %c0_2 = arith.constant 0 : index
    %1 = vector.load %arg2[%c0_1, %c0_2] : memref<16x128xf32, #tpu.memory_space<vmem>>, vector<16x128xf32>
    %cst = arith.constant dense<0.000000e+00> : vector<64x128xf32>
    %2 = tpu.matmul %0, %1, %cst {dimension_numbers = #tpu.dot_dimension_numbers<[1], [0], [0], [1], [0, 0, 1, 1], [], []>} : vector<64x16xf32>, vector<16x128xf32>, vector<64x128xf32> -> vector<64x128xf32>
    %c0_3 = arith.constant 0 : index
    %c0_4 = arith.constant 0 : index
    %3 = vector.load %arg4[%c0_3, %c0_4] : memref<1x128xf32, #tpu.memory_space<vmem>>, vector<1x128xf32>
    %4 = vector.broadcast %3 : vector<1x128xf32> to vector<64x128xf32>
    %5 = arith.addf %2, %4 : vector<64x128xf32>
    %c0_5 = arith.constant 0 : index
    %c0_6 = arith.constant 0 : index
    %6 = vector.load %arg6[%c0_5, %c0_6] : memref<64x128xf32, #tpu.memory_space<vmem>>, vector<64x128xf32>
    tpu.vector_store %arg6[%c0_5, %c0_6], %5 {strides = array<i32>} : memref<64x128xf32, #tpu.memory_space<vmem>>, vector<64x128xf32>,
    %c0_7 = arith.constant 0 : index
    %c0_8 = arith.constant 0 : index
    %7 = vector.load %arg3[%c0_7, %c0_8] : memref<32x128xf32, #tpu.memory_space<vmem>>, vector<32x128xf32>
    %cst_9 = arith.constant 0.000000e+00 : f32
    %8 = vector.broadcast %cst_9 : f32 to vector<8x32xf32>
    %cst_10 = arith.constant 0.000000e+00 : f32
    %9 = vector.broadcast %cst_10 : f32 to vector<8x32xf32>
    %c0_i32 = arith.constant 0 : i32
    %c8_i32 = arith.constant 8 : i32
    %10 = arith.muli %c0_i32, %c8_i32 : i32
    %11 = tpu.assume_multiple %10, 8 : i32
    %12 = arith.index_cast %11 : i32 to index
    %c0_11 = arith.constant 0 : index
    %13 = vector.load %arg6[%12, %c0_11] : memref<64x128xf32, #tpu.memory_space<vmem>>, vector<8x128xf32>
    %cst_12 = arith.constant dense<0.000000e+00> : vector<8x128xf32>
    %14 = tpu.matmul %8, %7, %cst_12 {dimension_numbers = #tpu.dot_dimension_numbers<[1], [0], [0], [1], [0, 0, 1, 1], [], []>} : vector<8x32xf32>, vector<32x128xf32>, vector<8x128xf32> -> vector<8x128xf32>
    %15 = arith.addf %13, %14 : vector<8x128xf32>
    %16 = arith.negf %15 : vector<8x128xf32>
    %17 = math.exp %16 : vector<8x128xf32>
    %cst_13 = arith.constant 1.000000e+00 : f32
    %18 = vector.broadcast %cst_13 : f32 to vector<8x128xf32>
    %19 = arith.addf %18, %17 : vector<8x128xf32>
    %20 = arith.divf %18, %19 : vector<8x128xf32>
    %21 = math.tanh %15 : vector<8x128xf32>
    %22 = vector.extract_strided_slice %20 {offsets = [0, 0], sizes = [8, 32], strides = [1, 1]} : vector<8x128xf32> to vector<8x32xf32>
    %23 = vector.extract_strided_slice %20 {offsets = [0, 32], sizes = [8, 32], strides = [1, 1]} : vector<8x128xf32> to vector<8x32xf32>
    %24 = vector.extract_strided_slice %21 {offsets = [0, 64], sizes = [8, 32], strides = [1, 1]} : vector<8x128xf32> to vector<8x32xf32>
    %25 = vector.extract_strided_slice %20 {offsets = [0, 96], sizes = [8, 32], strides = [1, 1]} : vector<8x128xf32> to vector<8x32xf32>
    %26 = arith.mulf %23, %9 : vector<8x32xf32>
    %27 = arith.mulf %22, %24 : vector<8x32xf32>
    %28 = arith.addf %26, %27 : vector<8x32xf32>
    %29 = math.tanh %28 : vector<8x32xf32>
    %30 = arith.mulf %25, %29 : vector<8x32xf32>
    %31 = arith.index_cast %11 : i32 to index
    %c0_14 = arith.constant 0 : index
    %32 = vector.load %arg1[%31, %c0_14] : memref<64x1xf32, #tpu.memory_space<vmem>>, vector<8x1xf32>
    %cst_15 = arith.constant 5.000000e-01 : f32
    %33 = vector.broadcast %cst_15 : f32 to vector<8x1xf32>
    %34 = arith.cmpf ogt, %32, %33 : vector<8x1xf32>
    %35 = vector.shape_cast %34 : vector<8x1xi1> to vector<8x1xi1>
    %36 = vector.broadcast %35 : vector<8x1xi1> to vector<8x32xi1>
    %37 = arith.select %36, %28, %9 : vector<8x32xi1>, vector<8x32xf32>
    %38 = vector.shape_cast %34 : vector<8x1xi1> to vector<8x1xi1>
    %39 = vector.broadcast %38 : vector<8x1xi1> to vector<8x32xi1>
    %40 = arith.select %39, %30, %8 : vector<8x32xi1>, vector<8x32xf32>
    %cst_16 = arith.constant 0.000000e+00 : f32
    %41 = vector.shape_cast %34 : vector<8x1xi1> to vector<8x1xi1>
    %42 = vector.broadcast %41 : vector<8x1xi1> to vector<8x32xi1>
    %43 = vector.broadcast %cst_16 : f32 to vector<8x32xf32>
    %44 = arith.select %42, %30, %43 : vector<8x32xi1>, vector<8x32xf32>
    %45 = arith.index_cast %11 : i32 to index
    %c0_17 = arith.constant 0 : index
    %46 = vector.load %arg5[%45, %c0_17] : memref<64x32xf32, #tpu.memory_space<vmem>>, vector<8x32xf32>
    tpu.vector_store %arg5[%45, %c0_17], %44 {strides = array<i32>} : memref<64x32xf32, #tpu.memory_space<vmem>>, vector<8x32xf32>,
    %c1_i32 = arith.constant 1 : i32
    %c8_i32_18 = arith.constant 8 : i32
    %47 = arith.muli %c1_i32, %c8_i32_18 : i32
    %48 = tpu.assume_multiple %47, 8 : i32
    %49 = arith.index_cast %48 : i32 to index
    %c0_19 = arith.constant 0 : index
    %50 = vector.load %arg6[%49, %c0_19] : memref<64x128xf32, #tpu.memory_space<vmem>>, vector<8x128xf32>
    %cst_20 = arith.constant dense<0.000000e+00> : vector<8x128xf32>
    %51 = tpu.matmul %40, %7, %cst_20 {dimension_numbers = #tpu.dot_dimension_numbers<[1], [0], [0], [1], [0, 0, 1, 1], [], []>} : vector<8x32xf32>, vector<32x128xf32>, vector<8x128xf32> -> vector<8x128xf32>
    %52 = arith.addf %50, %51 : vector<8x128xf32>
    %53 = arith.negf %52 : vector<8x128xf32>
    %54 = math.exp %53 : vector<8x128xf32>
    %cst_21 = arith.constant 1.000000e+00 : f32
    %55 = vector.broadcast %cst_21 : f32 to vector<8x128xf32>
    %56 = arith.addf %55, %54 : vector<8x128xf32>
    %57 = arith.divf %55, %56 : vector<8x128xf32>
    %58 = math.tanh %52 : vector<8x128xf32>
    %59 = vector.extract_strided_slice %57 {offsets = [0, 0], sizes = [8, 32], strides = [1, 1]} : vector<8x128xf32> to vector<8x32xf32>
    %60 = vector.extract_strided_slice %57 {offsets = [0, 32], sizes = [8, 32], strides = [1, 1]} : vector<8x128xf32> to vector<8x32xf32>
    %61 = vector.extract_strided_slice %58 {offsets = [0, 64], sizes = [8, 32], strides = [1, 1]} : vector<8x128xf32> to vector<8x32xf32>
    %62 = vector.extract_strided_slice %57 {offsets = [0, 96], sizes = [8, 32], strides = [1, 1]} : vector<8x128xf32> to vector<8x32xf32>
    %63 = arith.mulf %60, %37 : vector<8x32xf32>
    %64 = arith.mulf %59, %61 : vector<8x32xf32>
    %65 = arith.addf %63, %64 : vector<8x32xf32>
    %66 = math.tanh %65 : vector<8x32xf32>
    %67 = arith.mulf %62, %66 : vector<8x32xf32>
    %68 = arith.index_cast %48 : i32 to index
    %c0_22 = arith.constant 0 : index
    %69 = vector.load %arg1[%68, %c0_22] : memref<64x1xf32, #tpu.memory_space<vmem>>, vector<8x1xf32>
    %cst_23 = arith.constant 5.000000e-01 : f32
    %70 = vector.broadcast %cst_23 : f32 to vector<8x1xf32>
    %71 = arith.cmpf ogt, %69, %70 : vector<8x1xf32>
    %72 = vector.shape_cast %71 : vector<8x1xi1> to vector<8x1xi1>
    %73 = vector.broadcast %72 : vector<8x1xi1> to vector<8x32xi1>
    %74 = arith.select %73, %65, %37 : vector<8x32xi1>, vector<8x32xf32>
    %75 = vector.shape_cast %71 : vector<8x1xi1> to vector<8x1xi1>
    %76 = vector.broadcast %75 : vector<8x1xi1> to vector<8x32xi1>
    %77 = arith.select %76, %67, %40 : vector<8x32xi1>, vector<8x32xf32>
    %cst_24 = arith.constant 0.000000e+00 : f32
    %78 = vector.shape_cast %71 : vector<8x1xi1> to vector<8x1xi1>
    %79 = vector.broadcast %78 : vector<8x1xi1> to vector<8x32xi1>
    %80 = vector.broadcast %cst_24 : f32 to vector<8x32xf32>
    %81 = arith.select %79, %67, %80 : vector<8x32xi1>, vector<8x32xf32>
    %82 = arith.index_cast %48 : i32 to index
    %c0_25 = arith.constant 0 : index
    %83 = vector.load %arg5[%82, %c0_25] : memref<64x32xf32, #tpu.memory_space<vmem>>, vector<8x32xf32>
    tpu.vector_store %arg5[%82, %c0_25], %81 {strides = array<i32>} : memref<64x32xf32, #tpu.memory_space<vmem>>, vector<8x32xf32>,
    %c2_i32 = arith.constant 2 : i32
    %c8_i32_26 = arith.constant 8 : i32
    %84 = arith.muli %c2_i32, %c8_i32_26 : i32
    %85 = tpu.assume_multiple %84, 8 : i32
    %86 = arith.index_cast %85 : i32 to index
    %c0_27 = arith.constant 0 : index
    %87 = vector.load %arg6[%86, %c0_27] : memref<64x128xf32, #tpu.memory_space<vmem>>, vector<8x128xf32>
    %cst_28 = arith.constant dense<0.000000e+00> : vector<8x128xf32>
    %88 = tpu.matmul %77, %7, %cst_28 {dimension_numbers = #tpu.dot_dimension_numbers<[1], [0], [0], [1], [0, 0, 1, 1], [], []>} : vector<8x32xf32>, vector<32x128xf32>, vector<8x128xf32> -> vector<8x128xf32>
    %89 = arith.addf %87, %88 : vector<8x128xf32>
    %90 = arith.negf %89 : vector<8x128xf32>
    %91 = math.exp %90 : vector<8x128xf32>
    %cst_29 = arith.constant 1.000000e+00 : f32
    %92 = vector.broadcast %cst_29 : f32 to vector<8x128xf32>
    %93 = arith.addf %92, %91 : vector<8x128xf32>
    %94 = arith.divf %92, %93 : vector<8x128xf32>
    %95 = math.tanh %89 : vector<8x128xf32>
    %96 = vector.extract_strided_slice %94 {offsets = [0, 0], sizes = [8, 32], strides = [1, 1]} : vector<8x128xf32> to vector<8x32xf32>
    %97 = vector.extract_strided_slice %94 {offsets = [0, 32], sizes = [8, 32], strides = [1, 1]} : vector<8x128xf32> to vector<8x32xf32>
    %98 = vector.extract_strided_slice %95 {offsets = [0, 64], sizes = [8, 32], strides = [1, 1]} : vector<8x128xf32> to vector<8x32xf32>
    %99 = vector.extract_strided_slice %94 {offsets = [0, 96], sizes = [8, 32], strides = [1, 1]} : vector<8x128xf32> to vector<8x32xf32>
    %100 = arith.mulf %97, %74 : vector<8x32xf32>
    %101 = arith.mulf %96, %98 : vector<8x32xf32>
    %102 = arith.addf %100, %101 : vector<8x32xf32>
    %103 = math.tanh %102 : vector<8x32xf32>
    %104 = arith.mulf %99, %103 : vector<8x32xf32>
    %105 = arith.index_cast %85 : i32 to index
    %c0_30 = arith.constant 0 : index
    %106 = vector.load %arg1[%105, %c0_30] : memref<64x1xf32, #tpu.memory_space<vmem>>, vector<8x1xf32>
    %cst_31 = arith.constant 5.000000e-01 : f32
    %107 = vector.broadcast %cst_31 : f32 to vector<8x1xf32>
    %108 = arith.cmpf ogt, %106, %107 : vector<8x1xf32>
    %109 = vector.shape_cast %108 : vector<8x1xi1> to vector<8x1xi1>
    %110 = vector.broadcast %109 : vector<8x1xi1> to vector<8x32xi1>
    %111 = arith.select %110, %102, %74 : vector<8x32xi1>, vector<8x32xf32>
    %112 = vector.shape_cast %108 : vector<8x1xi1> to vector<8x1xi1>
    %113 = vector.broadcast %112 : vector<8x1xi1> to vector<8x32xi1>
    %114 = arith.select %113, %104, %77 : vector<8x32xi1>, vector<8x32xf32>
    %cst_32 = arith.constant 0.000000e+00 : f32
    %115 = vector.shape_cast %108 : vector<8x1xi1> to vector<8x1xi1>
    %116 = vector.broadcast %115 : vector<8x1xi1> to vector<8x32xi1>
    %117 = vector.broadcast %cst_32 : f32 to vector<8x32xf32>
    %118 = arith.select %116, %104, %117 : vector<8x32xi1>, vector<8x32xf32>
    %119 = arith.index_cast %85 : i32 to index
    %c0_33 = arith.constant 0 : index
    %120 = vector.load %arg5[%119, %c0_33] : memref<64x32xf32, #tpu.memory_space<vmem>>, vector<8x32xf32>
    tpu.vector_store %arg5[%119, %c0_33], %118 {strides = array<i32>} : memref<64x32xf32, #tpu.memory_space<vmem>>, vector<8x32xf32>,
    %c3_i32 = arith.constant 3 : i32
    %c8_i32_34 = arith.constant 8 : i32
    %121 = arith.muli %c3_i32, %c8_i32_34 : i32
    %122 = tpu.assume_multiple %121, 8 : i32
    %123 = arith.index_cast %122 : i32 to index
    %c0_35 = arith.constant 0 : index
    %124 = vector.load %arg6[%123, %c0_35] : memref<64x128xf32, #tpu.memory_space<vmem>>, vector<8x128xf32>
    %cst_36 = arith.constant dense<0.000000e+00> : vector<8x128xf32>
    %125 = tpu.matmul %114, %7, %cst_36 {dimension_numbers = #tpu.dot_dimension_numbers<[1], [0], [0], [1], [0, 0, 1, 1], [], []>} : vector<8x32xf32>, vector<32x128xf32>, vector<8x128xf32> -> vector<8x128xf32>
    %126 = arith.addf %124, %125 : vector<8x128xf32>
    %127 = arith.negf %126 : vector<8x128xf32>
    %128 = math.exp %127 : vector<8x128xf32>
    %cst_37 = arith.constant 1.000000e+00 : f32
    %129 = vector.broadcast %cst_37 : f32 to vector<8x128xf32>
    %130 = arith.addf %129, %128 : vector<8x128xf32>
    %131 = arith.divf %129, %130 : vector<8x128xf32>
    %132 = math.tanh %126 : vector<8x128xf32>
    %133 = vector.extract_strided_slice %131 {offsets = [0, 0], sizes = [8, 32], strides = [1, 1]} : vector<8x128xf32> to vector<8x32xf32>
    %134 = vector.extract_strided_slice %131 {offsets = [0, 32], sizes = [8, 32], strides = [1, 1]} : vector<8x128xf32> to vector<8x32xf32>
    %135 = vector.extract_strided_slice %132 {offsets = [0, 64], sizes = [8, 32], strides = [1, 1]} : vector<8x128xf32> to vector<8x32xf32>
    %136 = vector.extract_strided_slice %131 {offsets = [0, 96], sizes = [8, 32], strides = [1, 1]} : vector<8x128xf32> to vector<8x32xf32>
    %137 = arith.mulf %134, %111 : vector<8x32xf32>
    %138 = arith.mulf %133, %135 : vector<8x32xf32>
    %139 = arith.addf %137, %138 : vector<8x32xf32>
    %140 = math.tanh %139 : vector<8x32xf32>
    %141 = arith.mulf %136, %140 : vector<8x32xf32>
    %142 = arith.index_cast %122 : i32 to index
    %c0_38 = arith.constant 0 : index
    %143 = vector.load %arg1[%142, %c0_38] : memref<64x1xf32, #tpu.memory_space<vmem>>, vector<8x1xf32>
    %cst_39 = arith.constant 5.000000e-01 : f32
    %144 = vector.broadcast %cst_39 : f32 to vector<8x1xf32>
    %145 = arith.cmpf ogt, %143, %144 : vector<8x1xf32>
    %146 = vector.shape_cast %145 : vector<8x1xi1> to vector<8x1xi1>
    %147 = vector.broadcast %146 : vector<8x1xi1> to vector<8x32xi1>
    %148 = arith.select %147, %139, %111 : vector<8x32xi1>, vector<8x32xf32>
    %149 = vector.shape_cast %145 : vector<8x1xi1> to vector<8x1xi1>
    %150 = vector.broadcast %149 : vector<8x1xi1> to vector<8x32xi1>
    %151 = arith.select %150, %141, %114 : vector<8x32xi1>, vector<8x32xf32>
    %cst_40 = arith.constant 0.000000e+00 : f32
    %152 = vector.shape_cast %145 : vector<8x1xi1> to vector<8x1xi1>
    %153 = vector.broadcast %152 : vector<8x1xi1> to vector<8x32xi1>
    %154 = vector.broadcast %cst_40 : f32 to vector<8x32xf32>
    %155 = arith.select %153, %141, %154 : vector<8x32xi1>, vector<8x32xf32>
    %156 = arith.index_cast %122 : i32 to index
    %c0_41 = arith.constant 0 : index
    %157 = vector.load %arg5[%156, %c0_41] : memref<64x32xf32, #tpu.memory_space<vmem>>, vector<8x32xf32>
    tpu.vector_store %arg5[%156, %c0_41], %155 {strides = array<i32>} : memref<64x32xf32, #tpu.memory_space<vmem>>, vector<8x32xf32>,
    %c4_i32 = arith.constant 4 : i32
    %c8_i32_42 = arith.constant 8 : i32
    %158 = arith.muli %c4_i32, %c8_i32_42 : i32
    %159 = tpu.assume_multiple %158, 8 : i32
    %160 = arith.index_cast %159 : i32 to index
    %c0_43 = arith.constant 0 : index
    %161 = vector.load %arg6[%160, %c0_43] : memref<64x128xf32, #tpu.memory_space<vmem>>, vector<8x128xf32>
    %cst_44 = arith.constant dense<0.000000e+00> : vector<8x128xf32>
    %162 = tpu.matmul %151, %7, %cst_44 {dimension_numbers = #tpu.dot_dimension_numbers<[1], [0], [0], [1], [0, 0, 1, 1], [], []>} : vector<8x32xf32>, vector<32x128xf32>, vector<8x128xf32> -> vector<8x128xf32>
    %163 = arith.addf %161, %162 : vector<8x128xf32>
    %164 = arith.negf %163 : vector<8x128xf32>
    %165 = math.exp %164 : vector<8x128xf32>
    %cst_45 = arith.constant 1.000000e+00 : f32
    %166 = vector.broadcast %cst_45 : f32 to vector<8x128xf32>
    %167 = arith.addf %166, %165 : vector<8x128xf32>
    %168 = arith.divf %166, %167 : vector<8x128xf32>
    %169 = math.tanh %163 : vector<8x128xf32>
    %170 = vector.extract_strided_slice %168 {offsets = [0, 0], sizes = [8, 32], strides = [1, 1]} : vector<8x128xf32> to vector<8x32xf32>
    %171 = vector.extract_strided_slice %168 {offsets = [0, 32], sizes = [8, 32], strides = [1, 1]} : vector<8x128xf32> to vector<8x32xf32>
    %172 = vector.extract_strided_slice %169 {offsets = [0, 64], sizes = [8, 32], strides = [1, 1]} : vector<8x128xf32> to vector<8x32xf32>
    %173 = vector.extract_strided_slice %168 {offsets = [0, 96], sizes = [8, 32], strides = [1, 1]} : vector<8x128xf32> to vector<8x32xf32>
    %174 = arith.mulf %171, %148 : vector<8x32xf32>
    %175 = arith.mulf %170, %172 : vector<8x32xf32>
    %176 = arith.addf %174, %175 : vector<8x32xf32>
    %177 = math.tanh %176 : vector<8x32xf32>
    %178 = arith.mulf %173, %177 : vector<8x32xf32>
    %179 = arith.index_cast %159 : i32 to index
    %c0_46 = arith.constant 0 : index
    %180 = vector.load %arg1[%179, %c0_46] : memref<64x1xf32, #tpu.memory_space<vmem>>, vector<8x1xf32>
    %cst_47 = arith.constant 5.000000e-01 : f32
    %181 = vector.broadcast %cst_47 : f32 to vector<8x1xf32>
    %182 = arith.cmpf ogt, %180, %181 : vector<8x1xf32>
    %183 = vector.shape_cast %182 : vector<8x1xi1> to vector<8x1xi1>
    %184 = vector.broadcast %183 : vector<8x1xi1> to vector<8x32xi1>
    %185 = arith.select %184, %176, %148 : vector<8x32xi1>, vector<8x32xf32>
    %186 = vector.shape_cast %182 : vector<8x1xi1> to vector<8x1xi1>
    %187 = vector.broadcast %186 : vector<8x1xi1> to vector<8x32xi1>
    %188 = arith.select %187, %178, %151 : vector<8x32xi1>, vector<8x32xf32>
    %cst_48 = arith.constant 0.000000e+00 : f32
    %189 = vector.shape_cast %182 : vector<8x1xi1> to vector<8x1xi1>
    %190 = vector.broadcast %189 : vector<8x1xi1> to vector<8x32xi1>
    %191 = vector.broadcast %cst_48 : f32 to vector<8x32xf32>
    %192 = arith.select %190, %178, %191 : vector<8x32xi1>, vector<8x32xf32>
    %193 = arith.index_cast %159 : i32 to index
    %c0_49 = arith.constant 0 : index
    %194 = vector.load %arg5[%193, %c0_49] : memref<64x32xf32, #tpu.memory_space<vmem>>, vector<8x32xf32>
    tpu.vector_store %arg5[%193, %c0_49], %192 {strides = array<i32>} : memref<64x32xf32, #tpu.memory_space<vmem>>, vector<8x32xf32>,
    %c5_i32 = arith.constant 5 : i32
    %c8_i32_50 = arith.constant 8 : i32
    %195 = arith.muli %c5_i32, %c8_i32_50 : i32
    %196 = tpu.assume_multiple %195, 8 : i32
    %197 = arith.index_cast %196 : i32 to index
    %c0_51 = arith.constant 0 : index
    %198 = vector.load %arg6[%197, %c0_51] : memref<64x128xf32, #tpu.memory_space<vmem>>, vector<8x128xf32>
    %cst_52 = arith.constant dense<0.000000e+00> : vector<8x128xf32>
    %199 = tpu.matmul %188, %7, %cst_52 {dimension_numbers = #tpu.dot_dimension_numbers<[1], [0], [0], [1], [0, 0, 1, 1], [], []>} : vector<8x32xf32>, vector<32x128xf32>, vector<8x128xf32> -> vector<8x128xf32>
    %200 = arith.addf %198, %199 : vector<8x128xf32>
    %201 = arith.negf %200 : vector<8x128xf32>
    %202 = math.exp %201 : vector<8x128xf32>
    %cst_53 = arith.constant 1.000000e+00 : f32
    %203 = vector.broadcast %cst_53 : f32 to vector<8x128xf32>
    %204 = arith.addf %203, %202 : vector<8x128xf32>
    %205 = arith.divf %203, %204 : vector<8x128xf32>
    %206 = math.tanh %200 : vector<8x128xf32>
    %207 = vector.extract_strided_slice %205 {offsets = [0, 0], sizes = [8, 32], strides = [1, 1]} : vector<8x128xf32> to vector<8x32xf32>
    %208 = vector.extract_strided_slice %205 {offsets = [0, 32], sizes = [8, 32], strides = [1, 1]} : vector<8x128xf32> to vector<8x32xf32>
    %209 = vector.extract_strided_slice %206 {offsets = [0, 64], sizes = [8, 32], strides = [1, 1]} : vector<8x128xf32> to vector<8x32xf32>
    %210 = vector.extract_strided_slice %205 {offsets = [0, 96], sizes = [8, 32], strides = [1, 1]} : vector<8x128xf32> to vector<8x32xf32>
    %211 = arith.mulf %208, %185 : vector<8x32xf32>
    %212 = arith.mulf %207, %209 : vector<8x32xf32>
    %213 = arith.addf %211, %212 : vector<8x32xf32>
    %214 = math.tanh %213 : vector<8x32xf32>
    %215 = arith.mulf %210, %214 : vector<8x32xf32>
    %216 = arith.index_cast %196 : i32 to index
    %c0_54 = arith.constant 0 : index
    %217 = vector.load %arg1[%216, %c0_54] : memref<64x1xf32, #tpu.memory_space<vmem>>, vector<8x1xf32>
    %cst_55 = arith.constant 5.000000e-01 : f32
    %218 = vector.broadcast %cst_55 : f32 to vector<8x1xf32>
    %219 = arith.cmpf ogt, %217, %218 : vector<8x1xf32>
    %220 = vector.shape_cast %219 : vector<8x1xi1> to vector<8x1xi1>
    %221 = vector.broadcast %220 : vector<8x1xi1> to vector<8x32xi1>
    %222 = arith.select %221, %213, %185 : vector<8x32xi1>, vector<8x32xf32>
    %223 = vector.shape_cast %219 : vector<8x1xi1> to vector<8x1xi1>
    %224 = vector.broadcast %223 : vector<8x1xi1> to vector<8x32xi1>
    %225 = arith.select %224, %215, %188 : vector<8x32xi1>, vector<8x32xf32>
    %cst_56 = arith.constant 0.000000e+00 : f32
    %226 = vector.shape_cast %219 : vector<8x1xi1> to vector<8x1xi1>
    %227 = vector.broadcast %226 : vector<8x1xi1> to vector<8x32xi1>
    %228 = vector.broadcast %cst_56 : f32 to vector<8x32xf32>
    %229 = arith.select %227, %215, %228 : vector<8x32xi1>, vector<8x32xf32>
    %230 = arith.index_cast %196 : i32 to index
    %c0_57 = arith.constant 0 : index
    %231 = vector.load %arg5[%230, %c0_57] : memref<64x32xf32, #tpu.memory_space<vmem>>, vector<8x32xf32>
    tpu.vector_store %arg5[%230, %c0_57], %229 {strides = array<i32>} : memref<64x32xf32, #tpu.memory_space<vmem>>, vector<8x32xf32>,
    %c6_i32 = arith.constant 6 : i32
    %c8_i32_58 = arith.constant 8 : i32
    %232 = arith.muli %c6_i32, %c8_i32_58 : i32
    %233 = tpu.assume_multiple %232, 8 : i32
    %234 = arith.index_cast %233 : i32 to index
    %c0_59 = arith.constant 0 : index
    %235 = vector.load %arg6[%234, %c0_59] : memref<64x128xf32, #tpu.memory_space<vmem>>, vector<8x128xf32>
    %cst_60 = arith.constant dense<0.000000e+00> : vector<8x128xf32>
    %236 = tpu.matmul %225, %7, %cst_60 {dimension_numbers = #tpu.dot_dimension_numbers<[1], [0], [0], [1], [0, 0, 1, 1], [], []>} : vector<8x32xf32>, vector<32x128xf32>, vector<8x128xf32> -> vector<8x128xf32>
    %237 = arith.addf %235, %236 : vector<8x128xf32>
    %238 = arith.negf %237 : vector<8x128xf32>
    %239 = math.exp %238 : vector<8x128xf32>
    %cst_61 = arith.constant 1.000000e+00 : f32
    %240 = vector.broadcast %cst_61 : f32 to vector<8x128xf32>
    %241 = arith.addf %240, %239 : vector<8x128xf32>
    %242 = arith.divf %240, %241 : vector<8x128xf32>
    %243 = math.tanh %237 : vector<8x128xf32>
    %244 = vector.extract_strided_slice %242 {offsets = [0, 0], sizes = [8, 32], strides = [1, 1]} : vector<8x128xf32> to vector<8x32xf32>
    %245 = vector.extract_strided_slice %242 {offsets = [0, 32], sizes = [8, 32], strides = [1, 1]} : vector<8x128xf32> to vector<8x32xf32>
    %246 = vector.extract_strided_slice %243 {offsets = [0, 64], sizes = [8, 32], strides = [1, 1]} : vector<8x128xf32> to vector<8x32xf32>
    %247 = vector.extract_strided_slice %242 {offsets = [0, 96], sizes = [8, 32], strides = [1, 1]} : vector<8x128xf32> to vector<8x32xf32>
    %248 = arith.mulf %245, %222 : vector<8x32xf32>
    %249 = arith.mulf %244, %246 : vector<8x32xf32>
    %250 = arith.addf %248, %249 : vector<8x32xf32>
    %251 = math.tanh %250 : vector<8x32xf32>
    %252 = arith.mulf %247, %251 : vector<8x32xf32>
    %253 = arith.index_cast %233 : i32 to index
    %c0_62 = arith.constant 0 : index
    %254 = vector.load %arg1[%253, %c0_62] : memref<64x1xf32, #tpu.memory_space<vmem>>, vector<8x1xf32>
    %cst_63 = arith.constant 5.000000e-01 : f32
    %255 = vector.broadcast %cst_63 : f32 to vector<8x1xf32>
    %256 = arith.cmpf ogt, %254, %255 : vector<8x1xf32>
    %257 = vector.shape_cast %256 : vector<8x1xi1> to vector<8x1xi1>
    %258 = vector.broadcast %257 : vector<8x1xi1> to vector<8x32xi1>
    %259 = arith.select %258, %250, %222 : vector<8x32xi1>, vector<8x32xf32>
    %260 = vector.shape_cast %256 : vector<8x1xi1> to vector<8x1xi1>
    %261 = vector.broadcast %260 : vector<8x1xi1> to vector<8x32xi1>
    %262 = arith.select %261, %252, %225 : vector<8x32xi1>, vector<8x32xf32>
    %cst_64 = arith.constant 0.000000e+00 : f32
    %263 = vector.shape_cast %256 : vector<8x1xi1> to vector<8x1xi1>
    %264 = vector.broadcast %263 : vector<8x1xi1> to vector<8x32xi1>
    %265 = vector.broadcast %cst_64 : f32 to vector<8x32xf32>
    %266 = arith.select %264, %252, %265 : vector<8x32xi1>, vector<8x32xf32>
    %267 = arith.index_cast %233 : i32 to index
    %c0_65 = arith.constant 0 : index
    %268 = vector.load %arg5[%267, %c0_65] : memref<64x32xf32, #tpu.memory_space<vmem>>, vector<8x32xf32>
    tpu.vector_store %arg5[%267, %c0_65], %266 {strides = array<i32>} : memref<64x32xf32, #tpu.memory_space<vmem>>, vector<8x32xf32>,
    %c7_i32 = arith.constant 7 : i32
    %c8_i32_66 = arith.constant 8 : i32
    %269 = arith.muli %c7_i32, %c8_i32_66 : i32
    %270 = tpu.assume_multiple %269, 8 : i32
    %271 = arith.index_cast %270 : i32 to index
    %c0_67 = arith.constant 0 : index
    %272 = vector.load %arg6[%271, %c0_67] : memref<64x128xf32, #tpu.memory_space<vmem>>, vector<8x128xf32>
    %cst_68 = arith.constant dense<0.000000e+00> : vector<8x128xf32>
    %273 = tpu.matmul %262, %7, %cst_68 {dimension_numbers = #tpu.dot_dimension_numbers<[1], [0], [0], [1], [0, 0, 1, 1], [], []>} : vector<8x32xf32>, vector<32x128xf32>, vector<8x128xf32> -> vector<8x128xf32>
    %274 = arith.addf %272, %273 : vector<8x128xf32>
    %275 = arith.negf %274 : vector<8x128xf32>
    %276 = math.exp %275 : vector<8x128xf32>
    %cst_69 = arith.constant 1.000000e+00 : f32
    %277 = vector.broadcast %cst_69 : f32 to vector<8x128xf32>
    %278 = arith.addf %277, %276 : vector<8x128xf32>
    %279 = arith.divf %277, %278 : vector<8x128xf32>
    %280 = math.tanh %274 : vector<8x128xf32>
    %281 = vector.extract_strided_slice %279 {offsets = [0, 0], sizes = [8, 32], strides = [1, 1]} : vector<8x128xf32> to vector<8x32xf32>
    %282 = vector.extract_strided_slice %279 {offsets = [0, 32], sizes = [8, 32], strides = [1, 1]} : vector<8x128xf32> to vector<8x32xf32>
    %283 = vector.extract_strided_slice %280 {offsets = [0, 64], sizes = [8, 32], strides = [1, 1]} : vector<8x128xf32> to vector<8x32xf32>
    %284 = vector.extract_strided_slice %279 {offsets = [0, 96], sizes = [8, 32], strides = [1, 1]} : vector<8x128xf32> to vector<8x32xf32>
    %285 = arith.mulf %282, %259 : vector<8x32xf32>
    %286 = arith.mulf %281, %283 : vector<8x32xf32>
    %287 = arith.addf %285, %286 : vector<8x32xf32>
    %288 = math.tanh %287 : vector<8x32xf32>
    %289 = arith.mulf %284, %288 : vector<8x32xf32>
    %290 = arith.index_cast %270 : i32 to index
    %c0_70 = arith.constant 0 : index
    %291 = vector.load %arg1[%290, %c0_70] : memref<64x1xf32, #tpu.memory_space<vmem>>, vector<8x1xf32>
    %cst_71 = arith.constant 5.000000e-01 : f32
    %292 = vector.broadcast %cst_71 : f32 to vector<8x1xf32>
    %293 = arith.cmpf ogt, %291, %292 : vector<8x1xf32>
    %294 = vector.shape_cast %293 : vector<8x1xi1> to vector<8x1xi1>
    %295 = vector.broadcast %294 : vector<8x1xi1> to vector<8x32xi1>
    %296 = arith.select %295, %287, %259 : vector<8x32xi1>, vector<8x32xf32>
    %297 = vector.shape_cast %293 : vector<8x1xi1> to vector<8x1xi1>
    %298 = vector.broadcast %297 : vector<8x1xi1> to vector<8x32xi1>
    %299 = arith.select %298, %289, %262 : vector<8x32xi1>, vector<8x32xf32>
    %cst_72 = arith.constant 0.000000e+00 : f32
    %300 = vector.shape_cast %293 : vector<8x1xi1> to vector<8x1xi1>
    %301 = vector.broadcast %300 : vector<8x1xi1> to vector<8x32xi1>
    %302 = vector.broadcast %cst_72 : f32 to vector<8x32xf32>
    %303 = arith.select %301, %289, %302 : vector<8x32xi1>, vector<8x32xf32>
    %304 = arith.index_cast %270 : i32 to index
    %c0_73 = arith.constant 0 : index
    %305 = vector.load %arg5[%304, %c0_73] : memref<64x32xf32, #tpu.memory_space<vmem>>, vector<8x32xf32>
    tpu.vector_store %arg5[%304, %c0_73], %303 {strides = array<i32>} : memref<64x32xf32, #tpu.memory_space<vmem>>, vector<8x32xf32>,
    %c8_i32_74 = arith.constant 8 : i32
    return
  }
}

</mosaic_0001>

<bundles_post_ra>
// kernel: lstm_seq2seq_encoder.1
= control target key start
LH: loop header
LB: loop body
LE: loop exit
PB: predicated region body
PF: predicated region fallthrough
CT: control target
= control target key end

     0   :  { %vm37_vm0 = vcmask 130048   ;;  %v1441_v0 = vmov 0.0|0.0   ;;  %vm1442_vm1 = vmmov 0   ;;  %v1443_v4 = vmov 0.0   ;;  %s1445_s11 = smov 64   ;;  %s1776_s2 = inlined_call_operand.vmem [shape: f32[16,128], index: 2, kind: input, shape index: {}]   ;;  %s1777_s3 = inlined_call_operand.vmem [shape: f32[32,128], index: 3, kind: input, shape index: {}]   ;;  %s1778_s0 = inlined_call_operand.vmem [shape: f32[64,16], index: 0, kind: input, shape index: {}]   ;;  %s1779_s1 = inlined_call_operand.vmem [shape: f32[64,1], index: 1, kind: input, shape index: {}]   ;;  %s1780_s4 = inlined_call_operand.vmem [shape: f32[1,128], index: 4, kind: input, shape index: {}]   ;;  %s1781_s5 = inlined_call_operand.vmem [shape: f32[64,32], index: 5, kind: output, shape index: {}]  }
   0x1   :  { %1321 = vmatprep.subr.bf16.mxu1 %v1441_v0  ;;  %v28_v1 = vld [vmem:[%s1776_s2] sm:$0xff]  ;;  %v29_v2 = vld [vmem:[%s1776_s2 + $0x8] sm:$0xff]  ;;  %1237 = vmatprep.mubr.msk.f32.mxu1 %vm1442_vm1, %v1443_v4  ;;  %v177_v9 = vld [vmem:[%s1777_s3 + $0x10] sm:$0xff]  ;;  %v1444_v13 = vmov 0   ;;  %vm180_vm4 = vcmask 261120  }
   0x2   :  { %v175_v3 = vld [vmem:[%s1777_s3] sm:$0xff]  ;;  %v1317_v5 = vpack.c.bf16 %v29_v2, %v28_v1  ;;  %v176_v6 = vld [vmem:[%s1777_s3 + $0x8] sm:$0xff]  ;;  %v178_v10 = vld [vmem:[%s1777_s3 + $0x18] sm:$0xff]  ;;  %1375 = vset.pattern.permute.xlu1 %v1444_v13  ;;  %1376 = vset.pattern.permute.xlu0 %v1444_v13 }
   0x3   :  { %v20_v7 = vld [vmem:[%s1778_s0] sm:$0xff]  ;;  %v1495_v8 = vpack.c.bf16 %v176_v6, %v175_v3  ;;  %v21_v11 = vld [vmem:[%s1778_s0 + $0x8] sm:$0xff]  ;;  %v1508_v12 = vpack.c.bf16 %v178_v10, %v177_v9  ;;  %v22_v56 = vld [vmem:[%s1778_s0 + $0x10] sm:$0xff] }
   0x4   :  { %1217 = vmatprep.mubr.msk.f32.mxu0 %vm37_vm0, %v20_v7  ;;  %1318 = vmatprep.subr.bf16.mxu0 %v1317_v5  ;;  %v279_v14 = vld [vmem:[%s1779_s1] sm:$0xff]  ;;  %v1137_v43 = vld [vmem:[%s1779_s1 + $0x8] sm:$0xff]  ;;  %v23_v57 = vld [vmem:[%s1778_s0 + $0x18] sm:$0xff] }
   0x5   :  { %1323 = vmatpush3.bf16.msra.mxu1 %v1495_v8  ;;  %1320 = vmatpush3.bf16.msra.mxu0 %v1317_v5  ;;  %vm280_vm2 = vcmp.gt.f32.partialorder %v279_v14, 0.5  ;;  %v1535_v16 = vld [vmem:[%s1780_s4] ss:$0 sm:$0xff]  ;;  %s1446_s4 = smov 32   ;;  %vm394_vm5 = vcmp.gt.f32.partialorder %v1137_v43, 0.5  ;;  %v25_v59 = vld [vmem:[%s1778_s0 + $0x28] sm:$0xff] }
   0x6   :  { %1324 = vmatprep.subr.bf16.mxu1 %v1441_v0  ;;  %1333 = vmatprep.subr.bf16.mxu0 %v1441_v0  ;;  %v281_v15 = vsel %vm280_vm2, 1, %v1444_v13  ;;  %v395_v45 = vsel %vm394_vm5, 1, %v1444_v13  ;;  %v24_v58 = vld [vmem:[%s1778_s0 + $0x20] sm:$0xff]  ;;  %v26_v60 = vld [vmem:[%s1778_s0 + $0x30] sm:$0xff]  ;;  %v27_v61 = vld [vmem:[%s1778_s0 + $0x38] sm:$0xff] }
   0x7   :  { %283 = vperm.xlu1 %1375, %v281_v15   ;;  %v1145_v43 = vld [vmem:[%s1779_s1 + $0x18] sm:$0xff] }
   0x8   :  { %1218 = vmatmul.mubr.msk.f32.vlgmr.msra.gmra.mrb[0].mxu0 %vm37_vm0, %v21_v11  ;;  %vm632_vm9 = vcmp.gt.f32.partialorder %v1145_v43, 0.5 }
   0x9   :  { %1326 = vmatpush3.bf16.msra.mxu1 %v1508_v12  ;;  %1335 = vmatpush3.bf16.msra.mxu0 %v1495_v8 }
   0xa   :  { %1327 = vmatprep.subr.bf16.mxu1 %v1441_v0  ;;  %1336 = vmatprep.subr.bf16.mxu0 %v1441_v0 }
   0xb   :  { %1220 = vmatprep.mubr.msk.f32.mxu0 %vm37_vm0, %v22_v56 }
   0xc   :  { %1238 = vmatmul.mubr.f32.vlgmr.msra.gmra.mrb[0].mxu1 %v1443_v4  ;;  %1221 = vmatmul.mubr.msk.f32.gmra.mrb[2].mxu0 %vm37_vm0, %v23_v57 }
   0xd   :  { %1329 = vmatpush3.bf16.msra.mxu1 %v1495_v8  ;;  %1248 = vmatprep.mubr.msk.f32.mxu1 %vm1442_vm1, %v1443_v4 }
   0xe   :  { %1330 = vmatprep.subr.bf16.mxu1 %v1441_v0  ;;  %1338 = vmatpush3.bf16.msra.mxu0 %v1508_v12 }
   0xf   :  { %1345 = vmatprep.subr.bf16.mxu0 %v1441_v0  ;;  %1223 = vmatprep.mubr.msk.f32.mxu0 %vm37_vm0, %v24_v58 }
  0x10   :  { %1224 = vmatmul.mubr.msk.f32.gmra.mrb[4].mxu0 %vm37_vm0, %v25_v59 }
  0x11   :  { %1332 = vmatpush3.bf16.msra.mxu1 %v1508_v12  ;;  %1226 = vmatprep.mubr.msk.f32.mxu0 %vm37_vm0, %v26_v60 }
  0x12   :  { %1339 = vmatprep.subr.bf16.mxu1 %v1441_v0 }
  0x14   :  { %1227 = vmatmul.mubr.msk.f32.gmra.mrb[6].mxu0 %vm37_vm0, %v27_v61 }
  0x15   :  { %1259 = vmatprep.mubr.msk.f32.mxu0 %vm1442_vm1, %v1443_v4 }
  0x86   :  { %v284_v34 = vpop.permute.xlu1 %283 }
  0x87   :  { %vm285_vm3 = vcmp.eq.s32.totalorder %v284_v34, 1 }
  0xdb   :  { %v1219_v17 = vpop.f32.mrb[0].mxu0 }
  0xdc   :  { %v128_v18 = vpop.f32.mrb[1].mxu0  ;;  %v134_v39 = vadd.f32 %v1219_v17, %v1535_v16 }
  0xdd   :  { %v129_v19 = vadd.f32 %v1535_v16, %v128_v18 }
  0xdf   :  { %v250_v20 = vpop.f32.mrb[0].mxu1  ;;  %v1222_v5 = vpop.f32.mrb[2].mxu0 }
  0xe0   :  { %v254_v21 = vadd.f32 %v250_v20, %v129_v19  ;;  %v1239_v22 = vpop.f32.mrb[1].mxu1  ;;  %v138_v6 = vpop.f32.mrb[3].mxu0  ;;  %v1141_v20 = vld [vmem:[%s1779_s1 + $0x10] sm:$0xff] }
  0xe1   :  { %v139_v15 = vadd.f32 %v1535_v16, %v138_v6  ;;  %vm513_vm7 = vcmp.gt.f32.partialorder %v1141_v20, 0.5  ;;  %v1149_v6 = vld [vmem:[%s1779_s1 + $0x20] sm:$0xff] }
  0xe2   :  { %1377 = vtanh.f32 %v254_v21  ;;  %v1134_v24 = vmul.f32 -1.442695, %v254_v21  ;;  %v514_v22 = vsel %vm513_vm7, 1, %v1444_v13  ;;  %vm751_vm11 = vcmp.gt.f32.partialorder %v1149_v6, 0.5 }
  0xe3   :  { %v1598_v7 = vpop.f32.mrb[4].mxu0 }
  0xe4   :  { %1379 = vpow2.f32 %v1134_v24  ;;  %v1600_v9 = vpop.f32.mrb[5].mxu0 }
  0xe7   :  { %v1602_v10 = vpop.f32.mrb[6].mxu0 }
  0xe8   :  { %v1604_v11 = vpop.f32.mrb[7].mxu0 }
  0xec   :  { %v1378_v23 = vpop.eup %1377 }
  0xed   :  { %264 = vrot.lane.b32.xlu0 %v1378_v23, %s1445_s11 }
  0xee   :  { %v1380_v25 = vpop.eup %1379 }
  0xef   :  { %v258_v26 = vadd.f32 1.0, %v1380_v25 }
  0xf1   :  { %1381 = vrcp.f32 %v258_v26 }
  0xfb   :  { %v1382_v27 = vpop.eup %1381 }
  0xfc   :  { %v262_v30 = vmul.f32 0.0, %v1382_v27 }
 0x15f   :  { %v265_v28 = vpop.permute.xlu0 %264 }
 0x160   :  { %v267_v29 = vmul.f32 %v1382_v27, %v265_v28 }
 0x162   :  { %269 = vrot.lane.b32.xlu0 %v267_v29, %s1446_s4 }
 0x1d4   :  { %v270_v31 = vpop.permute.xlu0 %269 }
 0x1d5   :  { %v272_v32 = vadd.f32 %v270_v31, %v262_v30 }
 0x1d7   :  { %1383 = vtanh.f32 %v272_v32  ;;  %v286_v52 = vsel %vm285_vm3, %v272_v32, 0.0 }
 0x1e1   :  { %v1384_v33 = vpop.eup %1383 }
 0x1e2   :  { %275 = vrot.lane.b32.xlu1 %v1384_v33, %s1445_s11 }
 0x254   :  { %v276_v35 = vpop.permute.xlu1 %275 }
 0x255   :  { %v278_v36 = vmul.f32 %v1382_v27, %v276_v35 }
 0x257   :  { %v287_v37 = vsel %vm285_vm3, %v278_v36, 0.0 }
 0x258   :  { %289 = vrot.lane.b32.xlu0 %v287_v37, %s1446_s4 }
 0x2ca   :  { %v290_v38 = vpop.permute.xlu0 %289 }
 0x2cb   :  { %292 = vst.msk [vmem:[%s1781_s5] sm:$0xff] %vm180_vm4, %v290_v38  ;;  %1249 = vmatmul.mubr.msk.f32.vlgmr.msra.gmra.mrb[2].mxu1 %vm180_vm4, %v290_v38 }
 0x2cc   :  { %1341 = vmatpush3.bf16.msra.mxu1 %v1495_v8  ;;  %1270 = vmatprep.mubr.msk.f32.mxu1 %vm1442_vm1, %v1443_v4 }
 0x2cd   :  { %1342 = vmatprep.subr.bf16.mxu1 %v1441_v0 }
 0x2d0   :  { %1344 = vmatpush3.bf16.msra.mxu1 %v1508_v12 }
 0x2d1   :  { %1351 = vmatprep.subr.bf16.mxu1 %v1441_v0 }
 0x39e   :  { %v363_v40 = vpop.f32.mrb[2].mxu1 }
 0x39f   :  { %v367_v41 = vadd.f32 %v363_v40, %v134_v39  ;;  %v1250_v42 = vpop.f32.mrb[3].mxu1  ;;  %v144_v39 = vadd.f32 %v1222_v5, %v1535_v16 }
 0x3a1   :  { %1385 = vtanh.f32 %v367_v41  ;;  %v1136_v46 = vmul.f32 -1.442695, %v367_v41 }
 0x3a3   :  { %1387 = vpow2.f32 %v1136_v46 }
 0x3ab   :  { %v1386_v44 = vpop.eup %1385 }
 0x3ac   :  { %377 = vrot.lane.b32.xlu1 %v1386_v44, %s1445_s11 }
 0x3ad   :  { %v1388_v47 = vpop.eup %1387 }
 0x3ae   :  { %v371_v48 = vadd.f32 1.0, %v1388_v47 }
 0x3b0   :  { %397 = vperm.xlu1 %1375, %v395_v45   ;;  %1389 = vrcp.f32 %v371_v48  ;;  %v633_v45 = vsel %vm632_vm9, 1, %v1444_v13 }
 0x3ba   :  { %v1390_v49 = vpop.eup %1389 }
 0x3bb   :  { %v375_v53 = vmul.f32 %v1390_v49, %v286_v52 }
 0x41e   :  { %v378_v50 = vpop.permute.xlu1 %377 }
 0x41f   :  { %v380_v51 = vmul.f32 %v1390_v49, %v378_v50 }
 0x421   :  { %382 = vrot.lane.b32.xlu0 %v380_v51, %s1446_s4 }
 0x42f   :  { %v1589_v63 = vpop.permute.xlu1 %397 }
 0x430   :  { %vm399_vm6 = vcmp.eq.s32.totalorder %v1589_v63, 1 }
 0x493   :  { %v383_v54 = vpop.permute.xlu0 %382 }
 0x494   :  { %v385_v55 = vadd.f32 %v383_v54, %v375_v53 }
 0x496   :  { %1391 = vtanh.f32 %v385_v55  ;;  %v400_v29 = vsel %vm399_vm6, %v385_v55, %v286_v52 }
 0x4a0   :  { %v1392_v62 = vpop.eup %1391 }
 0x4a1   :  { %388 = vrot.lane.b32.xlu0 %v1392_v62, %s1445_s11  ;;  %v149_v62 = vadd.f32 %v1535_v16, %v1600_v9 }
 0x513   :  { %v389_v1 = vpop.permute.xlu0 %388 }
 0x514   :  { %v1591_v2 = vmul.f32 %v1390_v49, %v389_v1 }
 0x516   :  { %v401_v3 = vsel %vm399_vm6, %v1591_v2, %v287_v37 }
 0x517   :  { %412 = vrot.lane.b32.xlu1 %v401_v3, %s1446_s4 }
 0x589   :  { %v413_v14 = vpop.permute.xlu1 %412 }
 0x58a   :  { %1260 = vmatmul.mubr.msk.f32.vlgmr.msra.gmra.mrb[8].mxu0 %vm180_vm4, %v413_v14 }
 0x58b   :  { %1347 = vmatpush3.bf16.msra.mxu0 %v1495_v8  ;;  %1281 = vmatprep.mubr.msk.f32.mxu0 %vm1442_vm1, %v1443_v4 }
 0x58c   :  { %1348 = vmatprep.subr.bf16.mxu0 %v1441_v0 }
 0x58f   :  { %1350 = vmatpush3.bf16.msra.mxu0 %v1508_v12 }
 0x590   :  { %1357 = vmatprep.subr.bf16.mxu0 %v1441_v0 }
 0x65d   :  { %v482_v17 = vpop.f32.mrb[8].mxu0 }
 0x65e   :  { %v486_v18 = vadd.f32 %v482_v17, %v139_v15  ;;  %v1261_v19 = vpop.f32.mrb[9].mxu0  ;;  %v752_v15 = vsel %vm751_vm11, 1, %v1444_v13 }
 0x660   :  { %1393 = vtanh.f32 %v486_v18  ;;  %v1140_v23 = vmul.f32 -1.442695, %v486_v18 }
 0x662   :  { %1395 = vpow2.f32 %v1140_v23 }
 0x66a   :  { %v1394_v21 = vpop.eup %1393 }
 0x66b   :  { %496 = vrot.lane.b32.xlu0 %v1394_v21, %s1445_s11 }
 0x66c   :  { %v1396_v24 = vpop.eup %1395 }
 0x66d   :  { %v490_v25 = vadd.f32 1.0, %v1396_v24 }
 0x66f   :  { %516 = vperm.xlu0 %1376, %v514_v22   ;;  %1397 = vrcp.f32 %v490_v25 }
 0x679   :  { %v1398_v26 = vpop.eup %1397 }
 0x67a   :  { %v494_v30 = vmul.f32 %v1398_v26, %v400_v29 }
 0x6dd   :  { %v497_v27 = vpop.permute.xlu0 %496 }
 0x6de   :  { %v499_v28 = vmul.f32 %v1398_v26, %v497_v27 }
 0x6e0   :  { %501 = vrot.lane.b32.xlu1 %v499_v28, %s1446_s4 }
 0x6ee   :  { %v1623_v34 = vpop.permute.xlu0 %516 }
 0x6ef   :  { %vm518_vm8 = vcmp.eq.s32.totalorder %v1623_v34, 1 }
 0x752   :  { %v502_v31 = vpop.permute.xlu1 %501 }
 0x753   :  { %v504_v32 = vadd.f32 %v502_v31, %v494_v30 }
 0x755   :  { %1399 = vtanh.f32 %v504_v32  ;;  %v519_v52 = vsel %vm518_vm8, %v504_v32, %v400_v29  ;;  %v154_v32 = vadd.f32 %v1598_v7, %v1535_v16 }
 0x75f   :  { %v1400_v33 = vpop.eup %1399 }
 0x760   :  { %507 = vrot.lane.b32.xlu1 %v1400_v33, %s1445_s11 }
 0x7d2   :  { %v508_v35 = vpop.permute.xlu1 %507 }
 0x7d3   :  { %v1625_v36 = vmul.f32 %v1398_v26, %v508_v35 }
 0x7d5   :  { %v520_v37 = vsel %vm518_vm8, %v1625_v36, %v401_v3 }
 0x7d6   :  { %531 = vrot.lane.b32.xlu1 %v520_v37, %s1446_s4 }
 0x848   :  { %v532_v38 = vpop.permute.xlu1 %531 }
 0x849   :  { %1271 = vmatmul.mubr.msk.f32.vlgmr.msra.gmra.mrb[4].mxu1 %vm180_vm4, %v532_v38  ;;  %v1153_v38 = vld [vmem:[%s1779_s1 + $0x28] sm:$0xff] }
 0x84a   :  { %1353 = vmatpush3.bf16.msra.mxu1 %v1495_v8  ;;  %1292 = vmatprep.mubr.msk.f32.mxu1 %vm1442_vm1, %v1443_v4  ;;  %vm870_vm13 = vcmp.gt.f32.partialorder %v1153_v38, 0.5 }
 0x84b   :  { %1354 = vmatprep.subr.bf16.mxu1 %v1441_v0 }
 0x84e   :  { %1356 = vmatpush3.bf16.msra.mxu1 %v1508_v12 }
 0x84f   :  { %1363 = vmatprep.subr.bf16.mxu1 %v1441_v0 }
 0x91c   :  { %v601_v40 = vpop.f32.mrb[4].mxu1 }
 0x91d   :  { %v605_v41 = vadd.f32 %v601_v40, %v144_v39  ;;  %v1272_v42 = vpop.f32.mrb[5].mxu1 }
 0x91f   :  { %1401 = vtanh.f32 %v605_v41  ;;  %v1144_v46 = vmul.f32 -1.442695, %v605_v41 }
 0x921   :  { %1403 = vpow2.f32 %v1144_v46 }
 0x929   :  { %v1402_v44 = vpop.eup %1401 }
 0x92a   :  { %615 = vrot.lane.b32.xlu0 %v1402_v44, %s1445_s11 }
 0x92b   :  { %v1404_v47 = vpop.eup %1403 }
 0x92c   :  { %v609_v48 = vadd.f32 1.0, %v1404_v47 }
 0x92e   :  { %635 = vperm.xlu0 %1376, %v633_v45   ;;  %1405 = vrcp.f32 %v609_v48 }
 0x938   :  { %v1406_v49 = vpop.eup %1405 }
 0x939   :  { %v613_v53 = vmul.f32 %v1406_v49, %v519_v52 }
 0x99c   :  { %v616_v50 = vpop.permute.xlu0 %615 }
 0x99d   :  { %v618_v51 = vmul.f32 %v1406_v49, %v616_v50 }
 0x99f   :  { %620 = vrot.lane.b32.xlu1 %v618_v51, %s1446_s4 }
 0x9ad   :  { %v1649_v57 = vpop.permute.xlu0 %635 }
 0x9ae   :  { %vm637_vm10 = vcmp.eq.s32.totalorder %v1649_v57, 1 }
 0xa11   :  { %v621_v54 = vpop.permute.xlu1 %620 }
 0xa12   :  { %v623_v55 = vadd.f32 %v621_v54, %v613_v53 }
 0xa14   :  { %1407 = vtanh.f32 %v623_v55  ;;  %v638_v22 = vsel %vm637_vm10, %v623_v55, %v519_v52  ;;  %v159_v52 = vadd.f32 %v1535_v16, %v1604_v11 }
 0xa1e   :  { %v1408_v56 = vpop.eup %1407 }
 0xa1f   :  { %626 = vrot.lane.b32.xlu1 %v1408_v56, %s1445_s11  ;;  %v1157_v56 = vld [vmem:[%s1779_s1 + $0x30] sm:$0xff] }
 0xa20   :  { %vm989_vm15 = vcmp.gt.f32.partialorder %v1157_v56, 0.5 }
 0xa91   :  { %v627_v58 = vpop.permute.xlu1 %626 }
 0xa92   :  { %v1651_v59 = vmul.f32 %v1406_v49, %v627_v58 }
 0xa94   :  { %v639_v60 = vsel %vm637_vm10, %v1651_v59, %v520_v37 }
 0xa95   :  { %650 = vrot.lane.b32.xlu0 %v639_v60, %s1446_s4 }
 0xb07   :  { %v651_v61 = vpop.permute.xlu0 %650 }
 0xb08   :  { %1282 = vmatmul.mubr.msk.f32.vlgmr.msra.gmra.mrb[10].mxu0 %vm180_vm4, %v651_v61 }
 0xb09   :  { %1359 = vmatpush3.bf16.msra.mxu0 %v1495_v8  ;;  %1303 = vmatprep.mubr.msk.f32.mxu0 %vm1442_vm1, %v1443_v4 }
 0xb0a   :  { %1360 = vmatprep.subr.bf16.mxu0 %v1441_v0 }
 0xb0d   :  { %1362 = vmatpush3.bf16.msra.mxu0 %v1508_v12 }
 0xbdb   :  { %v720_v1 = vpop.f32.mrb[10].mxu0 }
 0xbdc   :  { %v724_v3 = vadd.f32 %v720_v1, %v149_v62  ;;  %v1283_v5 = vpop.f32.mrb[11].mxu0 }
 0xbde   :  { %1409 = vtanh.f32 %v724_v3  ;;  %v1148_v17 = vmul.f32 -1.442695, %v724_v3 }
 0xbe0   :  { %1411 = vpow2.f32 %v1148_v17 }
 0xbe8   :  { %v1410_v14 = vpop.eup %1409 }
 0xbe9   :  { %734 = vrot.lane.b32.xlu1 %v1410_v14, %s1445_s11 }
 0xbea   :  { %v1412_v18 = vpop.eup %1411 }
 0xbeb   :  { %v728_v19 = vadd.f32 1.0, %v1412_v18 }
 0xbed   :  { %754 = vperm.xlu1 %1375, %v752_v15   ;;  %1413 = vrcp.f32 %v728_v19 }
 0xbf7   :  { %v1414_v9 = vpop.eup %1413 }
 0xbf8   :  { %v732_v23 = vmul.f32 %v1414_v9, %v638_v22 }
 0xc5b   :  { %v735_v20 = vpop.permute.xlu1 %734 }
 0xc5c   :  { %v737_v21 = vmul.f32 %v1414_v9, %v735_v20 }
 0xc5e   :  { %739 = vrot.lane.b32.xlu0 %v737_v21, %s1446_s4 }
 0xc6c   :  { %v1675_v27 = vpop.permute.xlu1 %754 }
 0xc6d   :  { %vm756_vm12 = vcmp.eq.s32.totalorder %v1675_v27, 1 }
 0xcd0   :  { %v740_v24 = vpop.permute.xlu0 %739 }
 0xcd1   :  { %v742_v25 = vadd.f32 %v740_v24, %v732_v23  ;;  %v164_v23 = vadd.f32 %v1602_v10, %v1535_v16  ;;  %v640_v16 = vsel %vm637_vm10, %v1651_v59, 0.0 }
 0xcd3   :  { %1415 = vtanh.f32 %v742_v25  ;;  %v757_v42 = vsel %vm756_vm12, %v742_v25, %v638_v22 }
 0xcdd   :  { %v1416_v26 = vpop.eup %1415 }
 0xcde   :  { %745 = vrot.lane.b32.xlu0 %v1416_v26, %s1445_s11 }
 0xd50   :  { %v746_v28 = vpop.permute.xlu0 %745 }
 0xd51   :  { %v1677_v29 = vmul.f32 %v1414_v9, %v746_v28  ;;  %v1161_v28 = vld [vmem:[%s1779_s1 + $0x38] sm:$0xff] }
 0xd53   :  { %v758_v30 = vsel %vm756_vm12, %v1677_v29, %v639_v60  ;;  %v990_v60 = vsel %vm989_vm15, 1, %v1444_v13 }
 0xd54   :  { %769 = vrot.lane.b32.xlu1 %v758_v30, %s1446_s4 }
 0xdc6   :  { %v770_v31 = vpop.permute.xlu1 %769 }
 0xdc7   :  { %1293 = vmatmul.mubr.msk.f32.vlgmr.msra.gmra.mrb[6].mxu1 %vm180_vm4, %v770_v31 }
 0xdc8   :  { %1365 = vmatpush3.bf16.msra.mxu1 %v1495_v8  ;;  %1314 = vmatprep.mubr.msk.f32.mxu1 %vm1442_vm1, %v1443_v4  ;;  %v871_v4 = vsel %vm870_vm13, 1, %v1444_v13  ;;  %vm1108_vm1 = vcmp.gt.f32.partialorder %v1161_v28, 0.5 }
 0xdc9   :  { %1366 = vmatprep.subr.bf16.mxu1 %v1441_v0  ;;  %v1109_v31 = vsel %vm1108_vm1, 1, %v1444_v13 }
 0xdcc   :  { %1368 = vmatpush3.bf16.msra.mxu1 %v1508_v12 }
 0xe9a   :  { %v839_v33 = vpop.f32.mrb[6].mxu1 }
 0xe9b   :  { %v843_v35 = vadd.f32 %v839_v33, %v154_v32  ;;  %v1294_v37 = vpop.f32.mrb[7].mxu1  ;;  %v402_v32 = vsel %vm399_vm6, %v1591_v2, 0.0 }
 0xe9d   :  { %1417 = vtanh.f32 %v843_v35  ;;  %v1152_v0 = vmul.f32 -1.442695, %v843_v35 }
 0xe9f   :  { %1419 = vpow2.f32 %v1152_v0 }
 0xea7   :  { %v1418_v8 = vpop.eup %1417 }
 0xea8   :  { %853 = vrot.lane.b32.xlu0 %v1418_v8, %s1445_s11 }
 0xea9   :  { %v1420_v12 = vpop.eup %1419 }
 0xeaa   :  { %v847_v39 = vadd.f32 1.0, %v1420_v12 }
 0xeac   :  { %873 = vperm.xlu0 %1376, %v871_v4   ;;  %1421 = vrcp.f32 %v847_v39 }
 0xeb6   :  { %v1422_v7 = vpop.eup %1421 }
 0xeb7   :  { %v851_v43 = vmul.f32 %v1422_v7, %v757_v42 }
 0xf1a   :  { %v854_v40 = vpop.permute.xlu0 %853 }
 0xf1b   :  { %v856_v41 = vmul.f32 %v1422_v7, %v854_v40  ;;  %v521_v40 = vsel %vm518_vm8, %v1625_v36, 0.0 }
 0xf1d   :  { %858 = vrot.lane.b32.xlu1 %v856_v41, %s1446_s4  ;;  %v759_v41 = vsel %vm756_vm12, %v1677_v29, 0.0 }
 0xf2b   :  { %v874_v47 = vpop.permute.xlu0 %873 }
 0xf2c   :  { %vm875_vm14 = vcmp.eq.s32.totalorder %v874_v47, 1 }
 0xf8f   :  { %v859_v44 = vpop.permute.xlu1 %858 }
 0xf90   :  { %v861_v45 = vadd.f32 %v859_v44, %v851_v43 }
 0xf92   :  { %1423 = vtanh.f32 %v861_v45  ;;  %v876_v6 = vsel %vm875_vm14, %v861_v45, %v757_v42 }
 0xf9c   :  { %v1424_v46 = vpop.eup %1423 }
 0xf9d   :  { %864 = vrot.lane.b32.xlu1 %v1424_v46, %s1445_s11 }
0x100f   :  { %v865_v48 = vpop.permute.xlu1 %864 }
0x1010   :  { %v867_v49 = vmul.f32 %v1422_v7, %v865_v48 }
0x1012   :  { %v877_v50 = vsel %vm875_vm14, %v867_v49, %v758_v30  ;;  %v878_v10 = vsel %vm875_vm14, %v867_v49, 0.0 }
0x1013   :  { %888 = vrot.lane.b32.xlu0 %v877_v50, %s1446_s4 }
0x1085   :  { %v889_v51 = vpop.permute.xlu0 %888 }
0x1086   :  { %1304 = vmatmul.mubr.msk.f32.vlgmr.msra.gmra.mrb[12].mxu0 %vm180_vm4, %v889_v51 }
0x1159   :  { %v958_v53 = vpop.f32.mrb[12].mxu0 }
0x115a   :  { %v962_v54 = vadd.f32 %v958_v53, %v159_v52  ;;  %v1305_v55 = vpop.f32.mrb[13].mxu0 }
0x115c   :  { %1425 = vtanh.f32 %v962_v54  ;;  %v1156_v61 = vmul.f32 -1.442695, %v962_v54 }
0x115e   :  { %1427 = vpow2.f32 %v1156_v61 }
0x1166   :  { %v1426_v58 = vpop.eup %1425 }
0x1167   :  { %972 = vrot.lane.b32.xlu1 %v1426_v58, %s1445_s11 }
0x1168   :  { %v1428_v62 = vpop.eup %1427 }
0x1169   :  { %v966_v1 = vadd.f32 1.0, %v1428_v62 }
0x116b   :  { %992 = vperm.xlu1 %1375, %v990_v60   ;;  %1429 = vrcp.f32 %v966_v1 }
0x1175   :  { %v1430_v11 = vpop.eup %1429 }
0x1176   :  { %v970_v14 = vmul.f32 %v1430_v11, %v876_v6 }
0x11d9   :  { %v973_v3 = vpop.permute.xlu1 %972 }
0x11da   :  { %v975_v5 = vmul.f32 %v1430_v11, %v973_v3 }
0x11dc   :  { %977 = vrot.lane.b32.xlu0 %v975_v5, %s1446_s4 }
0x11ea   :  { %v993_v19 = vpop.permute.xlu1 %992 }
0x11eb   :  { %vm994_vm0 = vcmp.eq.s32.totalorder %v993_v19, 1 }
0x124e   :  { %v978_v15 = vpop.permute.xlu0 %977 }
0x124f   :  { %v980_v17 = vadd.f32 %v978_v15, %v970_v14 }
0x1251   :  { %1431 = vtanh.f32 %v980_v17  ;;  %v995_v4 = vsel %vm994_vm0, %v980_v17, %v876_v6 }
0x125b   :  { %v1432_v18 = vpop.eup %1431 }
0x125c   :  { %983 = vrot.lane.b32.xlu0 %v1432_v18, %s1445_s11 }
0x12ce   :  { %v984_v9 = vpop.permute.xlu0 %983 }
0x12cf   :  { %v986_v20 = vmul.f32 %v1430_v11, %v984_v9 }
0x12d1   :  { %v996_v21 = vsel %vm994_vm0, %v986_v20, %v877_v50  ;;  %v997_v42 = vsel %vm994_vm0, %v986_v20, 0.0 }
0x12d2   :  { %1007 = vrot.lane.b32.xlu1 %v996_v21, %s1446_s4 }
0x1344   :  { %v1008_v22 = vpop.permute.xlu1 %1007 }
0x1345   :  { %1315 = vmatmul.mubr.msk.f32.vlgmr.msra.gmra.mrb[8].mxu1 %vm180_vm4, %v1008_v22 }
0x1418   :  { %v1077_v24 = vpop.f32.mrb[8].mxu1 }
0x1419   :  { %v1081_v25 = vadd.f32 %v1077_v24, %v164_v23  ;;  %v1316_v26 = vpop.f32.mrb[9].mxu1 }
0x141b   :  { %1433 = vtanh.f32 %v1081_v25  ;;  %v1160_v33 = vmul.f32 -1.442695, %v1081_v25 }
0x141d   :  { %1435 = vpow2.f32 %v1160_v33 }
0x1425   :  { %v1434_v30 = vpop.eup %1433 }
0x1426   :  { %1091 = vrot.lane.b32.xlu0 %v1434_v30, %s1445_s11 }
0x1427   :  { %v1436_v13 = vpop.eup %1435 }
0x1428   :  { %v1085_v35 = vadd.f32 1.0, %v1436_v13 }
0x142a   :  { %1111 = vperm.xlu0 %1376, %v1109_v31   ;;  %1437 = vrcp.f32 %v1085_v35 }
0x142e   :  { %404 = vrot.lane.b32.xlu0 %v402_v32, %s1446_s4 }
0x1432   :  { %642 = vrot.lane.b32.xlu0 %v640_v16, %s1446_s4 }
0x1434   :  { %v1438_v37 = vpop.eup %1437 }
0x1435   :  { %v1089_v0 = vmul.f32 %v1438_v37, %v995_v4 }
0x1436   :  { %880 = vrot.lane.b32.xlu0 %v878_v10, %s1446_s4 }
0x1498   :  { %v1092_v63 = vpop.permute.xlu0 %1091 }
0x1499   :  { %v1094_v2 = vmul.f32 %v1438_v37, %v1092_v63 }
0x149b   :  { %1096 = vrot.lane.b32.xlu1 %v1094_v2, %s1446_s4 }
0x14a9   :  { %v1112_v38 = vpop.permute.xlu0 %1111 }
0x14aa   :  { %vm1113_vm2 = vcmp.eq.s32.totalorder %v1112_v38, 1 }
0x14ad   :  { %v405_v8 = vpop.permute.xlu0 %404 }
0x14ae   :  { %1138 = vst.msk [vmem:[%s1781_s5 + $0x8] sm:$0xff] %vm180_vm4, %v405_v8 }
0x14b1   :  { %v643_v57 = vpop.permute.xlu0 %642 }
0x14b2   :  { %1146 = vst.msk [vmem:[%s1781_s5 + $0x18] sm:$0xff] %vm180_vm4, %v643_v57 }
0x14b5   :  { %v881_v59 = vpop.permute.xlu0 %880 }
0x14b6   :  { %1154 = vst.msk [vmem:[%s1781_s5 + $0x28] sm:$0xff] %vm180_vm4, %v881_v59 }
0x150d   :  { %v1097_v12 = vpop.permute.xlu1 %1096 }
0x150e   :  { %v1099_v39 = vadd.f32 %v1097_v12, %v1089_v0 }
0x1510   :  { %1439 = vtanh.f32 %v1099_v39 }
0x151a   :  { %v1440_v7 = vpop.eup %1439 }
0x151b   :  { %1102 = vrot.lane.b32.xlu1 %v1440_v7, %s1445_s11 }
0x151f   :  { %523 = vrot.lane.b32.xlu1 %v521_v40, %s1446_s4 }
0x1523   :  { %761 = vrot.lane.b32.xlu1 %v759_v41, %s1446_s4 }
0x1527   :  { %999 = vrot.lane.b32.xlu1 %v997_v42, %s1446_s4 }
0x158d   :  { %v1103_v43 = vpop.permute.xlu1 %1102 }
0x158e   :  { %v1105_v44 = vmul.f32 %v1438_v37, %v1103_v43 }
0x1590   :  { %v1114_v45 = vsel %vm1113_vm2, %v1105_v44, 0.0 }
0x1591   :  { %1116 = vrot.lane.b32.xlu0 %v1114_v45, %s1446_s4  ;;  %v524_v34 = vpop.permute.xlu1 %523 }
0x1592   :  { %1142 = vst.msk [vmem:[%s1781_s5 + $0x10] sm:$0xff] %vm180_vm4, %v524_v34 }
0x1595   :  { %v762_v36 = vpop.permute.xlu1 %761 }
0x1596   :  { %1150 = vst.msk [vmem:[%s1781_s5 + $0x20] sm:$0xff] %vm180_vm4, %v762_v36 }
0x1599   :  { %v1000_v27 = vpop.permute.xlu1 %999 }
0x159a   :  { %1158 = vst.msk [vmem:[%s1781_s5 + $0x30] sm:$0xff] %vm180_vm4, %v1000_v27 }
0x1603   :  { %v1117_v29 = vpop.permute.xlu0 %1116 }
0x1604   :  { %1162 = vst.msk [vmem:[%s1781_s5 + $0x38] sm:$0xff] %vm180_vm4, %v1117_v29 }

</bundles_post_ra>
